<compile_context>
chip_gen: v5e
topology: v5e:2x2
jax: 0.10.0
libtpu: 0.0.40
codegen_flags: <defaults>
</compile_context>

<pallas_src>
import functools

import jax
import jax.numpy as jnp
from jax.experimental import pallas as pl
from jax.experimental.pallas import tpu as pltpu

IGNORE_INDEX = 255


def _fused_ce_kernel(out_ref, aux_ref, tgt_ref,
                     sum_out_ref, sum_aux_ref, cnt_ref,
                     sum_o_acc, sum_a_acc, cnt_acc,
                     *, hw, tp, tiles_per_split, needs_mask):
    """One (C, TP) pixel tile of masked CE for BOTH heads of one image.

    out_ref/aux_ref: (C, TP) logits, channels on sublanes, pixels on lanes
    tgt_ref:         (1, TP) int32 class index per pixel (255 = ignore)
    sum_out_ref/sum_aux_ref/cnt_ref: (1, 1) f32 per-(image,split) partials
    sum_o_acc/sum_a_acc/cnt_acc: (1, TP) f32 VMEM accumulators (persist over i)
    """
    s = pl.program_id(1)          # pixel-split index (parallel)
    i = pl.program_id(2)          # pixel-tile index within split (reduction)

    @pl.when(i == 0)
    def _():
        sum_o_acc[...] = jnp.zeros_like(sum_o_acc)
        sum_a_acc[...] = jnp.zeros_like(sum_a_acc)
        cnt_acc[...] = jnp.zeros_like(cnt_acc)

    tgt = tgt_ref[...]                                      # (1, TP) int32

    # Validity mask is logits-independent -> computed once, shared by out/aux.
    valid = tgt != IGNORE_INDEX                             # (1, TP) bool
    if needs_mask:
        # Ragged coverage: mask lanes past H*W (incl. fully out-of-range tiles
        # whose HBM block index was clamped to the last real block).
        lane = jax.lax.broadcasted_iota(jnp.int32, tgt.shape, 1)
        t = s * tiles_per_split + i                         # global tile index
        valid = jnp.logical_and(valid, (t * tp + lane) < hw)

    def _nll(logits_raw):
        z = logits_raw.astype(jnp.float32)                  # (C, TP)
        m = jnp.max(z, axis=0, keepdims=True)               # (1, TP)
        z = z - m
        lse = jnp.log(jnp.sum(jnp.exp(z), axis=0, keepdims=True))   # (1, TP)
        cls_iota = jax.lax.broadcasted_iota(jnp.int32, z.shape, 0)  # (C, TP)
        z_tgt = jnp.sum(jnp.where(cls_iota == tgt, z, 0.0),
                        axis=0, keepdims=True)              # (1, TP)
        return lse - z_tgt                                  # (1, TP) NLL

    # Keep jnp.where (a true select): garbage lanes of a partial block can have
    # inf/NaN lse and must not leak -- do NOT fold into a multiply.
    sum_o_acc[...] += jnp.where(valid, _nll(out_ref[...]), 0.0)
    sum_a_acc[...] += jnp.where(valid, _nll(aux_ref[...]), 0.0)
    cnt_acc[...] += valid.astype(jnp.float32)

    @pl.when(i == pl.num_programs(2) - 1)
    def _():
        # Cross-lane reduce once per (image, split), not per tile.
        sum_out_ref[...] = jnp.sum(sum_o_acc[...], axis=1, keepdims=True)
        sum_aux_ref[...] = jnp.sum(sum_a_acc[...], axis=1, keepdims=True)
        cnt_ref[...] = jnp.sum(cnt_acc[...], axis=1, keepdims=True)


def _fused_ce_partials(out_nchw, aux_nchw, tgt_nhw, *, tile_pixels,
                       num_pixel_splits):
    """Per-(image, pixel-split) (sum_out, sum_aux, count) partials."""
    n, c, h, w = out_nchw.shape
    assert aux_nchw.shape == out_nchw.shape, "out/aux logits must match"
    hw = h * w

    # NCHW -> (N, C, HW): contiguous reshape, pixels land on lanes.
    out3 = out_nchw.reshape(n, c, hw)
    aux3 = aux_nchw.reshape(n, c, hw)
    tgt3 = tgt_nhw.reshape(n, 1, hw).astype(jnp.int32)

    if hw <= tile_pixels:
        tp = hw                            # full extent: always a legal block
    else:
        assert tile_pixels % 128 == 0, "tile_pixels must be a multiple of 128"
        tp = tile_pixels
    total_tiles = pl.cdiv(hw, tp)

    if num_pixel_splits is None:
        n_splits = 2 if total_tiles >= 2 else 1   # keep both v7x TCs busy
    else:
        n_splits = max(1, min(int(num_pixel_splits), total_tiles))
    tiles_per_split = pl.cdiv(total_tiles, n_splits)
    needs_mask = (n_splits * tiles_per_split * tp) != hw
    last_block = total_tiles - 1

    def in_map(b, s, i):
        t = s * tiles_per_split + i
        # Clamp so the DMA never walks past the array; fully out-of-range
        # tiles are masked to zero contribution inside the kernel.
        return (b, 0, jnp.minimum(t, last_block))

    def out_map(b, s, i):
        return (b * n_splits + s, 0, 0)

    kernel = functools.partial(_fused_ce_kernel, hw=hw, tp=tp,
                               tiles_per_split=tiles_per_split,
                               needs_mask=needs_mask)

    # VMEM budget: 2 logits inputs x 2 buffers + targets x 2 + 3 f32 accs.
    itemsize = jnp.dtype(out_nchw.dtype).itemsize
    vmem_needed = (2 * 2 * c * tp * itemsize + 2 * tp * 4 + 3 * tp * 4
                   + (1 << 20))
    vmem_limit = int(min(max(vmem_needed, 32 << 20), 60 << 20))

    psum_o, psum_a, pcnt = pl.pallas_call(
        kernel,
        out_shape=(
            jax.ShapeDtypeStruct((n * n_splits, 1, 1), jnp.float32),
            jax.ShapeDtypeStruct((n * n_splits, 1, 1), jnp.float32),
            jax.ShapeDtypeStruct((n * n_splits, 1, 1), jnp.float32),
        ),
        grid_spec=pltpu.PrefetchScalarGridSpec(
            num_scalar_prefetch=0,
            grid=(n, n_splits, tiles_per_split),
            in_specs=[
                pl.BlockSpec((None, c, tp), in_map),   # out logits
                pl.BlockSpec((None, c, tp), in_map),   # aux logits
                pl.BlockSpec((None, 1, tp), in_map),   # targets (shared)
            ],
            out_specs=[
                pl.BlockSpec((None, 1, 1), out_map),   # per-(img,split) sum_out
                pl.BlockSpec((None, 1, 1), out_map),   # per-(img,split) sum_aux
                pl.BlockSpec((None, 1, 1), out_map),   # per-(img,split) count
            ],
            scratch_shapes=[
                pltpu.VMEM((1, tp), jnp.float32),      # running out-loss sum
                pltpu.VMEM((1, tp), jnp.float32),      # running aux-loss sum
                pltpu.VMEM((1, tp), jnp.float32),      # running valid count
            ],
        ),
        compiler_params=pltpu.CompilerParams(
            dimension_semantics=("parallel", "parallel", "arbitrary"),
            vmem_limit_bytes=vmem_limit,
        ),
    )(out3, aux3, tgt3)
    return psum_o, psum_a, pcnt


@functools.partial(jax.jit,
                   static_argnames=("aux_weight", "tile_pixels",
                                    "num_pixel_splits"))
def aux_loss(out_logits, aux_logits, targets, *, aux_weight=0.4,
             tile_pixels=32768, num_pixel_splits=None):
    """AuxLoss.forward: CE(out) + aux_weight * CE(aux), ignore_index=255."""
    psum_o, psum_a, pcnt = _fused_ce_partials(
        out_logits, aux_logits, targets,
        tile_pixels=tile_pixels, num_pixel_splits=num_pixel_splits)
    denom = jnp.sum(pcnt)        # NaN if every pixel is ignored (matches torch)
    loss = jnp.sum(psum_o) / denom
    loss_aux = jnp.sum(psum_a) / denom
    return loss + aux_weight * loss_aux


def aux_loss_forward(outputs, targets, *, aux_weight=0.4, tile_pixels=32768,
                     num_pixel_splits=None):
    """Dict-based entry point matching the PyTorch module signature."""
    return aux_loss(outputs["out"], outputs["aux"], targets,
                    aux_weight=aux_weight, tile_pixels=tile_pixels,
                    num_pixel_splits=num_pixel_splits)


# ----------------------- pure-JAX reference -----------------------

def _ref_ce(logits_nchw, targets_nhw):
    n, c, h, w = logits_nchw.shape
    lg = jnp.transpose(logits_nchw, (0, 2, 3, 1)).reshape(-1, c).astype(jnp.float32)
    t = targets_nhw.reshape(-1).astype(jnp.int32)
    logp = jax.nn.log_softmax(lg, axis=-1)
    valid = t != IGNORE_INDEX
    safe_t = jnp.where(valid, t, 0)
    nll = -jnp.take_along_axis(logp, safe_t[:, None], axis=-1)[:, 0]
    return jnp.sum(jnp.where(valid, nll, 0.0)) / jnp.sum(valid.astype(jnp.float32))


def _ref_aux_loss(out_logits, aux_logits, targets, aux_weight=0.4):
    return _ref_ce(out_logits, targets) + aux_weight * _ref_ce(aux_logits, targets)


if __name__ == "__main__":
    key = jax.random.PRNGKey(0)

    def make_case(k, n, c, h, w, dtype=jnp.float32):
        k_out, k_aux, k_tgt, k_ign = jax.random.split(k, 4)
        out = jax.random.normal(k_out, (n, c, h, w), dtype=jnp.float32).astype(dtype)
        aux = jax.random.normal(k_aux, (n, c, h, w), dtype=jnp.float32).astype(dtype)
        tgt = jax.random.randint(k_tgt, (n, h, w), 0, c, dtype=jnp.int32)
        ign = jax.random.bernoulli(k_ign, 0.1, (n, h, w))
        tgt = jnp.where(ign, jnp.int32(IGNORE_INDEX), tgt)
        return out, aux, tgt

    keys = jax.random.split(key, 2)

    # Case 1: C=8 f32, HW=400 (not a multiple of 128), default big tile
    #         -> single full-extent pixel tile, no split.
    o1, a1, t1 = make_case(keys[0], 2, 8, 20, 20)
    got1 = aux_loss_forward({"out": o1, "aux": a1}, t1)
    ref1 = _ref_aux_loss(o1, a1, t1)

    # Case 2: same data, tile_pixels=128 -> 4 tiles, 2-way pixel split,
    #         ragged last tile exercises the in-kernel lane mask.
    got2 = aux_loss_forward({"out": o1, "aux": a1}, t1, tile_pixels=128)

    # Case 3: CityScapes channel count C=19 in bf16, HW=384 -> 3 tiles of 128,
    #         2-way split with one clamped fully-out-of-range trailing tile
    #         (covers the bf16/odd-C sublane-packing paths).
    o3, a3, t3 = make_case(keys[1], 2, 19, 16, 24, dtype=jnp.bfloat16)
    got3 = aux_loss_forward({"out": o3, "aux": a3}, t3, tile_pixels=128)
    ref3 = _ref_aux_loss(o3, a3, t3)

    jax.block_until_ready((got1, got2, got3))

    assert jnp.allclose(got1, ref1, atol=1e-5, rtol=1e-5), (got1, ref1)
    assert jnp.allclose(got2, ref1, atol=1e-5, rtol=1e-5), (got2, ref1)
    assert jnp.allclose(got3, ref3, atol=1e-4, rtol=1e-4), (got3, ref3)

    print("KERNEL_OK")
</pallas_src>

<mosaic_0001>
module attributes {stable_mosaic.version = 11 : i64} {
  func.func @_fused_ce_kernel(%arg0: i32, %arg1: i32, %arg2: i32, %arg3: memref<1x8x400xf32, #tpu.memory_space<vmem>>, %arg4: memref<1x8x400xf32, #tpu.memory_space<vmem>>, %arg5: memref<1x1x400xi32, #tpu.memory_space<vmem>>, %arg6: memref<1x1x1xf32, #tpu.memory_space<vmem>>, %arg7: memref<1x1x1xf32, #tpu.memory_space<vmem>>, %arg8: memref<1x1x1xf32, #tpu.memory_space<vmem>>, %arg9: memref<1x400xf32, #tpu.memory_space<vmem>>, %arg10: memref<1x400xf32, #tpu.memory_space<vmem>>, %arg11: memref<1x400xf32, #tpu.memory_space<vmem>>) attributes {dimension_semantics = [#tpu.dimension_semantics<parallel>, #tpu.dimension_semantics<parallel>, #tpu.dimension_semantics<arbitrary>], iteration_bounds = array<i64: 2, 1, 1>, scalar_prefetch = 0 : i64, scratch_operands = 3 : i64, tpu.core_type = #tpu.core_type<tc>, window_params = [{transform_indices = @transform_0, window_bounds = array<i64: 1, 8, 400>}, {transform_indices = @transform_1, window_bounds = array<i64: 1, 8, 400>}, {transform_indices = @transform_2, window_bounds = array<i64: 1, 1, 400>}, {transform_indices = @transform_3, window_bounds = array<i64: 1, 1, 1>}, {transform_indices = @transform_4, window_bounds = array<i64: 1, 1, 1>}, {transform_indices = @transform_5, window_bounds = array<i64: 1, 1, 1>}]} {
    %c0_i32 = arith.constant 0 : i32
    %0 = arith.cmpi eq, %arg2, %c0_i32 : i32
    %1 = arith.extui %0 : i1 to i32
    %c0_i32_0 = arith.constant 0 : i32
    %2 = arith.cmpi ne, %1, %c0_i32_0 : i32
    scf.if %2 {
      %cst_32 = arith.constant 0.000000e+00 : f32
      %61 = vector.broadcast %cst_32 : f32 to vector<1x400xf32>
      %c0_33 = arith.constant 0 : index
      %c0_34 = arith.constant 0 : index
      %62 = vector.load %arg9[%c0_33, %c0_34] : memref<1x400xf32, #tpu.memory_space<vmem>>, vector<1x400xf32>
      tpu.vector_store %arg9[%c0_33, %c0_34], %61 {strides = array<i32>} : memref<1x400xf32, #tpu.memory_space<vmem>>, vector<1x400xf32>,
      %cst_35 = arith.constant 0.000000e+00 : f32
      %63 = vector.broadcast %cst_35 : f32 to vector<1x400xf32>
      %c0_36 = arith.constant 0 : index
      %c0_37 = arith.constant 0 : index
      %64 = vector.load %arg10[%c0_36, %c0_37] : memref<1x400xf32, #tpu.memory_space<vmem>>, vector<1x400xf32>
      tpu.vector_store %arg10[%c0_36, %c0_37], %63 {strides = array<i32>} : memref<1x400xf32, #tpu.memory_space<vmem>>, vector<1x400xf32>,
      %cst_38 = arith.constant 0.000000e+00 : f32
      %65 = vector.broadcast %cst_38 : f32 to vector<1x400xf32>
      %c0_39 = arith.constant 0 : index
      %c0_40 = arith.constant 0 : index
      %66 = vector.load %arg11[%c0_39, %c0_40] : memref<1x400xf32, #tpu.memory_space<vmem>>, vector<1x400xf32>
      tpu.vector_store %arg11[%c0_39, %c0_40], %65 {strides = array<i32>} : memref<1x400xf32, #tpu.memory_space<vmem>>, vector<1x400xf32>,
    } else {
    }
    %c0 = arith.constant 0 : index
    %c0_1 = arith.constant 0 : index
    %c0_2 = arith.constant 0 : index
    %3 = vector.load %arg5[%c0, %c0_1, %c0_2] : memref<1x1x400xi32, #tpu.memory_space<vmem>>, vector<1x1x400xi32>
    %4 = vector.shape_cast %3 : vector<1x1x400xi32> to vector<1x400xi32>
    %c255_i32 = arith.constant 255 : i32
    %5 = vector.broadcast %c255_i32 : i32 to vector<1x400xi32>
    %6 = arith.cmpi ne, %4, %5 : vector<1x400xi32>
    %c0_3 = arith.constant 0 : index
    %c0_4 = arith.constant 0 : index
    %7 = vector.load %arg9[%c0_3, %c0_4] : memref<1x400xf32, #tpu.memory_space<vmem>>, vector<1x400xf32>
    %c0_5 = arith.constant 0 : index
    %c0_6 = arith.constant 0 : index
    %c0_7 = arith.constant 0 : index
    %8 = vector.load %arg3[%c0_5, %c0_6, %c0_7] : memref<1x8x400xf32, #tpu.memory_space<vmem>>, vector<1x8x400xf32>
    %9 = vector.shape_cast %8 : vector<1x8x400xf32> to vector<8x400xf32>
    %cst = arith.constant dense<0xFF800000> : vector<400xf32>
    %10 = vector.multi_reduction <maximumf>, %9, %cst [0] : vector<8x400xf32> to vector<400xf32>
    %11 = vector.shape_cast %10 : vector<400xf32> to vector<1x400xf32>
    %12 = vector.broadcast %11 : vector<1x400xf32> to vector<8x400xf32>
    %13 = arith.subf %9, %12 : vector<8x400xf32>
    %14 = math.exp %13 : vector<8x400xf32>
    %cst_8 = arith.constant dense<0.000000e+00> : vector<400xf32>
    %15 = vector.multi_reduction <add>, %14, %cst_8 [0] : vector<8x400xf32> to vector<400xf32>
    %16 = vector.shape_cast %15 : vector<400xf32> to vector<1x400xf32>
    %17 = math.log %16 : vector<1x400xf32>
    %18 = tpu.iota {dimensions = array<i32: 0>} : vector<8x400xi32>
    %19 = vector.broadcast %4 : vector<1x400xi32> to vector<8x400xi32>
    %20 = arith.cmpi eq, %18, %19 : vector<8x400xi32>
    %cst_9 = arith.constant 0.000000e+00 : f32
    %21 = vector.broadcast %cst_9 : f32 to vector<8x400xf32>
    %22 = arith.select %20, %13, %21 : vector<8x400xi1>, vector<8x400xf32>
    %cst_10 = arith.constant dense<0.000000e+00> : vector<400xf32>
    %23 = vector.multi_reduction <add>, %22, %cst_10 [0] : vector<8x400xf32> to vector<400xf32>
    %24 = vector.shape_cast %23 : vector<400xf32> to vector<1x400xf32>
    %25 = arith.subf %17, %24 : vector<1x400xf32>
    %cst_11 = arith.constant 0.000000e+00 : f32
    %26 = vector.broadcast %cst_11 : f32 to vector<1x400xf32>
    %27 = arith.select %6, %25, %26 : vector<1x400xi1>, vector<1x400xf32>
    %28 = arith.addf %7, %27 : vector<1x400xf32>
    %c0_12 = arith.constant 0 : index
    %c0_13 = arith.constant 0 : index
    %29 = vector.load %arg9[%c0_12, %c0_13] : memref<1x400xf32, #tpu.memory_space<vmem>>, vector<1x400xf32>
    tpu.vector_store %arg9[%c0_12, %c0_13], %28 {strides = array<i32>} : memref<1x400xf32, #tpu.memory_space<vmem>>, vector<1x400xf32>,
    %c0_14 = arith.constant 0 : index
    %c0_15 = arith.constant 0 : index
    %30 = vector.load %arg10[%c0_14, %c0_15] : memref<1x400xf32, #tpu.memory_space<vmem>>, vector<1x400xf32>
    %c0_16 = arith.constant 0 : index
    %c0_17 = arith.constant 0 : index
    %c0_18 = arith.constant 0 : index
    %31 = vector.load %arg4[%c0_16, %c0_17, %c0_18] : memref<1x8x400xf32, #tpu.memory_space<vmem>>, vector<1x8x400xf32>
    %32 = vector.shape_cast %31 : vector<1x8x400xf32> to vector<8x400xf32>
    %cst_19 = arith.constant dense<0xFF800000> : vector<400xf32>
    %33 = vector.multi_reduction <maximumf>, %32, %cst_19 [0] : vector<8x400xf32> to vector<400xf32>
    %34 = vector.shape_cast %33 : vector<400xf32> to vector<1x400xf32>
    %35 = vector.broadcast %34 : vector<1x400xf32> to vector<8x400xf32>
    %36 = arith.subf %32, %35 : vector<8x400xf32>
    %37 = math.exp %36 : vector<8x400xf32>
    %cst_20 = arith.constant dense<0.000000e+00> : vector<400xf32>
    %38 = vector.multi_reduction <add>, %37, %cst_20 [0] : vector<8x400xf32> to vector<400xf32>
    %39 = vector.shape_cast %38 : vector<400xf32> to vector<1x400xf32>
    %40 = math.log %39 : vector<1x400xf32>
    %41 = tpu.iota {dimensions = array<i32: 0>} : vector<8x400xi32>
    %42 = vector.broadcast %4 : vector<1x400xi32> to vector<8x400xi32>
    %43 = arith.cmpi eq, %41, %42 : vector<8x400xi32>
    %cst_21 = arith.constant 0.000000e+00 : f32
    %44 = vector.broadcast %cst_21 : f32 to vector<8x400xf32>
    %45 = arith.select %43, %36, %44 : vector<8x400xi1>, vector<8x400xf32>
    %cst_22 = arith.constant dense<0.000000e+00> : vector<400xf32>
    %46 = vector.multi_reduction <add>, %45, %cst_22 [0] : vector<8x400xf32> to vector<400xf32>
    %47 = vector.shape_cast %46 : vector<400xf32> to vector<1x400xf32>
    %48 = arith.subf %40, %47 : vector<1x400xf32>
    %cst_23 = arith.constant 0.000000e+00 : f32
    %49 = vector.broadcast %cst_23 : f32 to vector<1x400xf32>
    %50 = arith.select %6, %48, %49 : vector<1x400xi1>, vector<1x400xf32>
    %51 = arith.addf %30, %50 : vector<1x400xf32>
    %c0_24 = arith.constant 0 : index
    %c0_25 = arith.constant 0 : index
    %52 = vector.load %arg10[%c0_24, %c0_25] : memref<1x400xf32, #tpu.memory_space<vmem>>, vector<1x400xf32>
    tpu.vector_store %arg10[%c0_24, %c0_25], %51 {strides = array<i32>} : memref<1x400xf32, #tpu.memory_space<vmem>>, vector<1x400xf32>,
    %c0_26 = arith.constant 0 : index
    %c0_27 = arith.constant 0 : index
    %53 = vector.load %arg11[%c0_26, %c0_27] : memref<1x400xf32, #tpu.memory_space<vmem>>, vector<1x400xf32>
    %54 = arith.extui %6 : vector<1x400xi1> to vector<1x400xi32>
    %55 = arith.sitofp %54 : vector<1x400xi32> to vector<1x400xf32>
    %56 = arith.addf %53, %55 : vector<1x400xf32>
    %c0_28 = arith.constant 0 : index
    %c0_29 = arith.constant 0 : index
    %57 = vector.load %arg11[%c0_28, %c0_29] : memref<1x400xf32, #tpu.memory_space<vmem>>, vector<1x400xf32>
    tpu.vector_store %arg11[%c0_28, %c0_29], %56 {strides = array<i32>} : memref<1x400xf32, #tpu.memory_space<vmem>>, vector<1x400xf32>,
    %c0_i32_30 = arith.constant 0 : i32
    %58 = arith.cmpi eq, %arg2, %c0_i32_30 : i32
    %59 = arith.extui %58 : i1 to i32
    %c0_i32_31 = arith.constant 0 : i32
    %60 = arith.cmpi ne, %59, %c0_i32_31 : i32
    scf.if %60 {
      %c0_32 = arith.constant 0 : index
      %c0_33 = arith.constant 0 : index
      %61 = vector.load %arg9[%c0_32, %c0_33] : memref<1x400xf32, #tpu.memory_space<vmem>>, vector<1x400xf32>
      %cst_34 = arith.constant dense<0.000000e+00> : vector<1xf32>
      %62 = vector.multi_reduction <add>, %61, %cst_34 [1] : vector<1x400xf32> to vector<1xf32>
      %63 = vector.shape_cast %62 : vector<1xf32> to vector<1x1xf32>
      %c0_35 = arith.constant 0 : index
      %c0_36 = arith.constant 0 : index
      %c0_37 = arith.constant 0 : index
      %64 = vector.load %arg6[%c0_35, %c0_36, %c0_37] : memref<1x1x1xf32, #tpu.memory_space<vmem>>, vector<1x1x1xf32>
      %65 = vector.shape_cast %64 : vector<1x1x1xf32> to vector<1x1xf32>
      %66 = vector.shape_cast %63 : vector<1x1xf32> to vector<1x1x1xf32>
      tpu.vector_store %arg6[%c0_35, %c0_36, %c0_37], %66 {strides = array<i32>} : memref<1x1x1xf32, #tpu.memory_space<vmem>>, vector<1x1x1xf32>,
      %c0_38 = arith.constant 0 : index
      %c0_39 = arith.constant 0 : index
      %67 = vector.load %arg10[%c0_38, %c0_39] : memref<1x400xf32, #tpu.memory_space<vmem>>, vector<1x400xf32>
      %cst_40 = arith.constant dense<0.000000e+00> : vector<1xf32>
      %68 = vector.multi_reduction <add>, %67, %cst_40 [1] : vector<1x400xf32> to vector<1xf32>
      %69 = vector.shape_cast %68 : vector<1xf32> to vector<1x1xf32>
      %c0_41 = arith.constant 0 : index
      %c0_42 = arith.constant 0 : index
      %c0_43 = arith.constant 0 : index
      %70 = vector.load %arg7[%c0_41, %c0_42, %c0_43] : memref<1x1x1xf32, #tpu.memory_space<vmem>>, vector<1x1x1xf32>
      %71 = vector.shape_cast %70 : vector<1x1x1xf32> to vector<1x1xf32>
      %72 = vector.shape_cast %69 : vector<1x1xf32> to vector<1x1x1xf32>
      tpu.vector_store %arg7[%c0_41, %c0_42, %c0_43], %72 {strides = array<i32>} : memref<1x1x1xf32, #tpu.memory_space<vmem>>, vector<1x1x1xf32>,
      %c0_44 = arith.constant 0 : index
      %c0_45 = arith.constant 0 : index
      %73 = vector.load %arg11[%c0_44, %c0_45] : memref<1x400xf32, #tpu.memory_space<vmem>>, vector<1x400xf32>
      %cst_46 = arith.constant dense<0.000000e+00> : vector<1xf32>
      %74 = vector.multi_reduction <add>, %73, %cst_46 [1] : vector<1x400xf32> to vector<1xf32>
      %75 = vector.shape_cast %74 : vector<1xf32> to vector<1x1xf32>
      %c0_47 = arith.constant 0 : index
      %c0_48 = arith.constant 0 : index
      %c0_49 = arith.constant 0 : index
      %76 = vector.load %arg8[%c0_47, %c0_48, %c0_49] : memref<1x1x1xf32, #tpu.memory_space<vmem>>, vector<1x1x1xf32>
      %77 = vector.shape_cast %76 : vector<1x1x1xf32> to vector<1x1xf32>
      %78 = vector.shape_cast %75 : vector<1x1xf32> to vector<1x1x1xf32>
      tpu.vector_store %arg8[%c0_47, %c0_48, %c0_49], %78 {strides = array<i32>} : memref<1x1x1xf32, #tpu.memory_space<vmem>>, vector<1x1x1xf32>,
    } else {
    }
    return
  }
  func.func @transform_0(%arg0: i32, %arg1: i32, %arg2: i32) -> (i32, i32, i32) {
    %c1_i32 = arith.constant 1 : i32
    %0 = arith.muli %arg1, %c1_i32 : i32
    %1 = arith.addi %0, %arg2 : i32
    %c0_i32 = arith.constant 0 : i32
    %2 = arith.minsi %1, %c0_i32 : i32
    %c0_i32_0 = arith.constant 0 : i32
    %c0_i32_1 = arith.constant 0 : i32
    return %arg0, %c0_i32_0, %2 : i32, i32, i32
  }
  func.func @transform_1(%arg0: i32, %arg1: i32, %arg2: i32) -> (i32, i32, i32) {
    %c1_i32 = arith.constant 1 : i32
    %0 = arith.muli %arg1, %c1_i32 : i32
    %1 = arith.addi %0, %arg2 : i32
    %c0_i32 = arith.constant 0 : i32
    %2 = arith.minsi %1, %c0_i32 : i32
    %c0_i32_0 = arith.constant 0 : i32
    %c0_i32_1 = arith.constant 0 : i32
    return %arg0, %c0_i32_0, %2 : i32, i32, i32
  }
  func.func @transform_2(%arg0: i32, %arg1: i32, %arg2: i32) -> (i32, i32, i32) {
    %c1_i32 = arith.constant 1 : i32
    %0 = arith.muli %arg1, %c1_i32 : i32
    %1 = arith.addi %0, %arg2 : i32
    %c0_i32 = arith.constant 0 : i32
    %2 = arith.minsi %1, %c0_i32 : i32
    %c0_i32_0 = arith.constant 0 : i32
    %c0_i32_1 = arith.constant 0 : i32
    return %arg0, %c0_i32_0, %2 : i32, i32, i32
  }
  func.func @transform_3(%arg0: i32, %arg1: i32, %arg2: i32) -> (i32, i32, i32) {
    %c1_i32 = arith.constant 1 : i32
    %0 = arith.muli %arg0, %c1_i32 : i32
    %1 = arith.addi %0, %arg1 : i32
    %c0_i32 = arith.constant 0 : i32
    %c0_i32_0 = arith.constant 0 : i32
    %c0_i32_1 = arith.constant 0 : i32
    return %1, %c0_i32, %c0_i32_0 : i32, i32, i32
  }
  func.func @transform_4(%arg0: i32, %arg1: i32, %arg2: i32) -> (i32, i32, i32) {
    %c1_i32 = arith.constant 1 : i32
    %0 = arith.muli %arg0, %c1_i32 : i32
    %1 = arith.addi %0, %arg1 : i32
    %c0_i32 = arith.constant 0 : i32
    %c0_i32_0 = arith.constant 0 : i32
    %c0_i32_1 = arith.constant 0 : i32
    return %1, %c0_i32, %c0_i32_0 : i32, i32, i32
  }
  func.func @transform_5(%arg0: i32, %arg1: i32, %arg2: i32) -> (i32, i32, i32) {
    %c1_i32 = arith.constant 1 : i32
    %0 = arith.muli %arg0, %c1_i32 : i32
    %1 = arith.addi %0, %arg1 : i32
    %c0_i32 = arith.constant 0 : i32
    %c0_i32_0 = arith.constant 0 : i32
    %c0_i32_1 = arith.constant 0 : i32
    return %1, %c0_i32, %c0_i32_0 : i32, i32, i32
  }
}

</mosaic_0001>

<bundles_post_ra>
// kernel: aux_loss.1
= control target key start
LH: loop header
LB: loop body
LE: loop exit
PB: predicated region body
PF: predicated region fallthrough
CT: control target
= control target key end

     0   :  { %s1049_s18 = smov 0   ;;  %s1051_s19 = smov 0   ;;  %s1221_s0 = inlined_call_operand.vmem [shape: f32[2,8,400], index: 0, kind: input, shape index: {}]   ;;  %s1222_s1 = inlined_call_operand.vmem [shape: f32[2,8,400], index: 1, kind: input, shape index: {}]   ;;  %s1223_s2 = inlined_call_operand.vmem [shape: s32[2,1,400], index: 2, kind: input, shape index: {}]   ;;  %s1224_s3 = inlined_call_operand.vmem [shape: f32[2,1,1], index: 3, kind: output, shape index: {0}]   ;;  %s1225_s4 = inlined_call_operand.vmem [shape: f32[2,1,1], index: 4, kind: output, shape index: {1}]   ;;  %s1226_s5 = inlined_call_operand.vmem [shape: f32[2,1,1], index: 5, kind: output, shape index: {2}]  }
   0x1   :  { %s1053_s20 = smov 0  }
   0x2 LB: > { %s35_s21 = sadd.s32 1, %s1012_s19  ;;  %p926_p0 = scmp.ge.s32.totalorder %s1016_s20, 1  ;;  %s1016_s20 = sphi %s1053_s20, %s16_s20   ;;  %s1012_s19 = sphi %s1051_s19, %s1238_s19   ;;  %s1008_s18 = sphi %s1049_s18, %s1237_s18  }
   0x3   : > { %p37_p1 = scmp.ge.s32.totalorder %s35_s21, 2  ;;  %p293_p2 = scmp.lt.s32.totalorder %s1016_s20, 3 }
   0x5   : > { %s1240_s21 = smov (%p37_p1, %s35_s21), 0  ;;  %p294_p3 = pnand %p926_p0, %p293_p2 }
   0x6   : > { %p362_p4 = scmp.lt.s32.totalorder (!%p294_p3), %s1008_s18, 1 }
   0x7   : > { %297 = sbr.rel (%p294_p3) target bundleno = 227 (0xe3), region = 32 }
   0xc   : > { %v424_v0 = vlaneseq  ;;  %s1242_s18 = smov (!%p362_p4, %s1008_s18), 1  ;;  %v1018_v2 = vmov 0.0   ;;  %vm456_vm1 = vcmask 130048   ;;  %vm559_vm7 = vcmask 1040384  }
   0xd   : > { %s935_s22 = sshll.u32 %s1242_s18, 5  ;;  %s931_s23 = sshll.u32 %s1242_s18, 2  ;;  %vm561_vm8 = vcmask 1042434   ;;  %vm563_vm9 = vcmask 1041408   ;;  %vm718_vm10 = vcmask 122880   ;;  %vm723_vm11 = vcmask 0  }
   0xe   : > { %vm1069_vm0 = vcmp.lt.s32.totalorder %v424_v0, 400  ;;  %s369_s26 = scalar_lea.vmem %s1221_s0, %s935_s22  ;;  %s400_s29 = scalar_lea.vmem %s1223_s2, %s931_s23  ;;  %v510_v12 = vshrl.u32 %v424_v0, 7 }
   0xf   : > { %428 = vst.msk [vmem:[#allocation2] sm:$0xf] %vm1069_vm0, %v1018_v2  ;;  %v434_v3 = vld [vmem:[%s369_s26] sm:$0xff]  ;;  %v435_v4 = vld [vmem:[%s369_s26 + $0x8] sm:$0xff]  ;;  %v436_v5 = vld [vmem:[%s369_s26 + $0x10] sm:$0xff]  ;;  %s385_s7 = scalar_lea.vmem %s1222_s1, %s935_s22  ;;  %s418_s10 = scalar_lea.vmem %s1226_s5, %s1242_s18 }
  0x10   : > { %429 = vst.msk [vmem:[#allocation3] sm:$0xf] %vm1069_vm0, %v1018_v2  ;;  %v1090_v6 = vld [vmem:[%s400_s29] sm:$0xf]  ;;  %v437_v7 = vld [vmem:[%s369_s26 + $0x18] sm:$0xff]  ;;  %v438_v8 = vrot.slane %v434_v3, 4  ;;  %s408_s13 = scalar_lea.vmem %s1224_s3, %s1242_s18  ;;  %s413_s16 = scalar_lea.vmem %s1225_s4, %s1242_s18 }
  0x11   : > { %430 = vst.msk [vmem:[#allocation4] sm:$0xf] %vm1069_vm0, %v1018_v2  ;;  %v444_v9 = vrot.slane %v435_v4, 4  ;;  %v450_v10 = vrot.slane %v436_v5, 4  ;;  %v457_v11 = vsel %vm456_vm1, %v437_v7, -inf  ;;  %v512_v13 = vperm.slane %v1090_v6, 1 }
  0x12   : > { %v513_v14 = vperm.slane %v1090_v6, 2  ;;  %v439_v15 = vmax.f32 %v434_v3, %v438_v8  ;;  %v458_v18 = vrot.slane %v457_v11, 4  ;;  %v1098_v19 = vld [vmem:[%s385_s7] sm:$0xff]  ;;  %v1100_v20 = vld [vmem:[%s385_s7 + $0x8] sm:$0xff]  ;;  %v511_v21 = vperm.slane %v1090_v6, 0  ;;  %v1104_v27 = vld [vmem:[%s385_s7 + $0x10] sm:$0xff] }
  0x13   : > { %v445_v16 = vmax.f32 %v435_v4, %v444_v9  ;;  %v451_v17 = vmax.f32 %v436_v5, %v450_v10  ;;  %v514_v22 = vperm.slane %v1090_v6, 3  ;;  %v1106_v28 = vld [vmem:[%s385_s7 + $0x18] sm:$0xff]  ;;  %vm1108_vm2 = vcmp.eq.s32.totalorder %v510_v12, %v512_v13 }
  0x14   : > { %v440_v23 = vrot.slane %v439_v15, 2  ;;  %v459_v26 = vmax.f32 %v457_v11, %v458_v18  ;;  %vm1112_vm3 = vcmp.eq.s32.totalorder %v510_v12, %v513_v14  ;;  %v578_v31 = vrot.slane %v1098_v19, 4 }
  0x15   : > { %v446_v24 = vrot.slane %v445_v16, 2  ;;  %v452_v25 = vrot.slane %v451_v17, 2  ;;  %v584_v32 = vrot.slane %v1100_v20, 4  ;;  %v590_v39 = vrot.slane %v1104_v27, 4 }
  0x16   : > { %v441_v33 = vmax.f32 %v439_v15, %v440_v23  ;;  %v460_v36 = vrot.slane %v459_v26, 2  ;;  %v579_v37 = vmax.f32 %v1098_v19, %v578_v31  ;;  %v596_v40 = vsel %vm456_vm1, %v1106_v28, -inf }
  0x17   : > { %v447_v34 = vmax.f32 %v445_v16, %v446_v24  ;;  %v453_v35 = vmax.f32 %v451_v17, %v452_v25  ;;  %v585_v38 = vmax.f32 %v1100_v20, %v584_v32  ;;  %v591_v47 = vmax.f32 %v1104_v27, %v590_v39 }
  0x18   : > { %v442_v41 = vrot.slane %v441_v33, 1  ;;  %v461_v44 = vmax.f32 %v459_v26, %v460_v36  ;;  %v580_v45 = vrot.slane %v579_v37, 2  ;;  %v597_v48 = vrot.slane %v596_v40, 4 }
  0x19   : > { %v448_v42 = vrot.slane %v447_v34, 1  ;;  %v454_v43 = vrot.slane %v453_v35, 1  ;;  %v586_v46 = vrot.slane %v585_v38, 2  ;;  %vm1124_vm4 = vcmp.eq.s32.totalorder %v510_v12, %v511_v21 }
  0x1a   : > { %v443_v49 = vmax.f32 %v441_v33, %v442_v41  ;;  %v462_v52 = vrot.slane %v461_v44, 1  ;;  %v581_v54 = vmax.f32 %v579_v37, %v580_v45  ;;  %v592_v55 = vrot.slane %v591_v47, 2 }
  0x1b   : > { %v449_v50 = vmax.f32 %v447_v34, %v448_v42  ;;  %v455_v51 = vmax.f32 %v453_v35, %v454_v43  ;;  %v598_v56 = vmax.f32 %v596_v40, %v597_v48  ;;  %vm1128_vm5 = vcmp.eq.s32.totalorder %v510_v12, %v514_v22 }
  0x1c   : > { %v463_v57 = vmax.f32 %v461_v44, %v462_v52  ;;  %v464_v58 = vsub.f32 %v434_v3, %v443_v49  ;;  %v582_v62 = vrot.slane %v581_v54, 1  ;;  %v587_v63 = vmax.f32 %v585_v38, %v586_v46 }
  0x1d   : > { %v465_v59 = vsub.f32 %v435_v4, %v449_v50  ;;  %v466_v60 = vsub.f32 %v436_v5, %v455_v51  ;;  %v593_v0 = vmax.f32 %v591_v47, %v592_v55  ;;  %v599_v4 = vrot.slane %v598_v56, 2 }
  0x1e   : > { %v467_v8 = vsub.f32 %v437_v7, %v463_v57  ;;  %v468_v9 = vmul.f32 1.442695, %v464_v58  ;;  %v519_v13 = vsel %vm1124_vm4, %v464_v58, 0.0  ;;  %v588_v22 = vrot.slane %v587_v63, 1 }
  0x1f   : > { %v470_v10 = vmul.f32 1.442695, %v465_v59  ;;  %v472_v11 = vmul.f32 1.442695, %v466_v60  ;;  %v520_v14 = vsel %vm1108_vm2, %v465_v59, 0.0  ;;  %v521_v3 = vsel %vm1112_vm3, %v466_v60, 0.0 }
  0x20   : > { %962 = vpow2.f32 %v468_v9  ;;  %v474_v5 = vmul.f32 1.442695, %v467_v8  ;;  %v522_v12 = vsel %vm1128_vm5, %v467_v8, 0.0  ;;  %v523_v15 = vrot.slane %v519_v13, 4 }
  0x21   : > { %964 = vpow2.f32 %v470_v10  ;;  %v529_v7 = vrot.slane %v520_v14, 4  ;;  %v535_v16 = vrot.slane %v521_v3, 4  ;;  %v541_v17 = vsel %vm456_vm1, %v522_v12, 0.0 }
  0x22   : > { %966 = vpow2.f32 %v472_v11  ;;  %v524_v18 = vadd.f32 %v523_v15, %v519_v13  ;;  %v542_v21 = vrot.slane %v541_v17, 4  ;;  %v583_v31 = vmax.f32 %v581_v54, %v582_v62 }
  0x23   : > { %968 = vpow2.f32 %v474_v5  ;;  %v530_v23 = vadd.f32 %v529_v7, %v520_v14  ;;  %v536_v24 = vadd.f32 %v535_v16, %v521_v3  ;;  %v594_v34 = vrot.slane %v593_v0, 1 }
  0x24   : > { %v525_v25 = vrot.slane %v524_v18, 2  ;;  %v543_v26 = vadd.f32 %v542_v21, %v541_v17  ;;  %v600_v35 = vmax.f32 %v598_v56, %v599_v4  ;;  %v589_v38 = vmax.f32 %v587_v63, %v588_v22 }
  0x25   : > { %v531_v32 = vrot.slane %v530_v23, 2  ;;  %v537_v33 = vrot.slane %v536_v24, 2  ;;  %v595_v50 = vmax.f32 %v593_v0, %v594_v34  ;;  %v603_v51 = vsub.f32 %v1098_v19, %v583_v31 }
  0x26   : > { %v963_v36 = vpop.eup %962  ;;  %v1141_v37 = vadd.f32 %v525_v25, %v524_v18  ;;  %v544_v41 = vrot.slane %v543_v26, 2  ;;  %v601_v46 = vrot.slane %v600_v35, 1  ;;  %v604_v56 = vsub.f32 %v1100_v20, %v589_v38 }
  0x27   : > { %v965_v39 = vpop.eup %964  ;;  %v476_v40 = vrot.slane %v963_v36, 4  ;;  %v532_v44 = vadd.f32 %v531_v32, %v530_v23  ;;  %v1143_v45 = vadd.f32 %v537_v33, %v536_v24  ;;  %v605_v19 = vsub.f32 %v1104_v27, %v595_v50 }
  0x28   : > { %v967_v42 = vpop.eup %966  ;;  %v482_v43 = vrot.slane %v965_v39, 4  ;;  %v527_v55 = vrot.slane %v1141_v37, 1  ;;  %v545_v60 = vadd.f32 %v544_v41, %v543_v26  ;;  %v602_v9 = vmax.f32 %v600_v35, %v601_v46 }
  0x29   : > { %v969_v47 = vpop.eup %968  ;;  %v477_v48 = vadd.f32 %v963_v36, %v476_v40  ;;  %v488_v49 = vrot.slane %v967_v42, 4  ;;  %v533_v63 = vrot.slane %v532_v44, 1  ;;  %v539_v8 = vrot.slane %v1143_v45, 1 }
  0x2a   : > { %v483_v52 = vadd.f32 %v965_v39, %v482_v43  ;;  %v494_v54 = vsel %vm456_vm1, %v969_v47, 0.0  ;;  %v606_v14 = vsub.f32 %v1106_v28, %v602_v9  ;;  %v607_v3 = vmul.f32 1.442695, %v603_v51 }
  0x2b   : > { %v478_v57 = vrot.slane %v477_v48, 2  ;;  %v489_v58 = vadd.f32 %v967_v42, %v488_v49  ;;  %v495_v59 = vrot.slane %v494_v54, 4  ;;  %v609_v4 = vmul.f32 1.442695, %v604_v56  ;;  %v695_v49 = vld [vmem:[#allocation4] sm:$0xf] }
  0x2c   : > { %v484_v62 = vrot.slane %v483_v52, 2  ;;  %v611_v15 = vmul.f32 1.442695, %v605_v19  ;;  %970 = vpow2.f32 %v607_v3  ;;  %v613_v16 = vmul.f32 1.442695, %v606_v14 }
  0x2d   : > { %v479_v10 = vadd.f32 %v478_v57, %v477_v48  ;;  %v490_v0 = vrot.slane %v489_v58, 2  ;;  %v496_v11 = vadd.f32 %v495_v59, %v494_v54  ;;  %v648_v17 = vsel %vm1124_vm4, %v603_v51, 0.0 }
  0x2e   : > { %v485_v13 = vadd.f32 %v484_v62, %v483_v52  ;;  %972 = vpow2.f32 %v609_v4  ;;  %v649_v28 = vsel %vm1108_vm2, %v604_v56, 0.0  ;;  %v650_v23 = vsel %vm1112_vm3, %v605_v19, 0.0 }
  0x2f   : > { %v480_v20 = vrot.slane %v479_v10, 1  ;;  %v491_v5 = vadd.f32 %v490_v0, %v489_v58  ;;  %v497_v12 = vrot.slane %v496_v11, 2  ;;  %974 = vpow2.f32 %v611_v15 }
  0x30   : > { %v486_v7 = vrot.slane %v485_v13, 1  ;;  %v546_v26 = vrot.slane %v545_v60, 1  ;;  %v651_v53 = vsel %vm1128_vm5, %v606_v14, 0.0  ;;  %v652_v31 = vrot.slane %v648_v17, 4 }
  0x31   : > { %v481_v18 = vadd.f32 %v480_v20, %v479_v10  ;;  %v492_v21 = vrot.slane %v491_v5, 1  ;;  %v498_v22 = vadd.f32 %v497_v12, %v496_v11  ;;  %v658_v32 = vrot.slane %v649_v28, 4 }
  0x32   : > { %v487_v27 = vadd.f32 %v486_v7, %v485_v13  ;;  %vm432_vm6 = vcmp.ne.s32.totalorder %v1090_v6, 255  ;;  %v664_v34 = vrot.slane %v650_v23, 4  ;;  %v971_v29 = vpop.eup %970  ;;  %v528_v35 = vadd.f32 %v527_v55, %v1141_v37 }
  0x33   : > { %v493_v24 = vadd.f32 %v492_v21, %v491_v5  ;;  %v499_v25 = vrot.slane %v498_v22, 1  ;;  %976 = vlog2.f32 %v481_v18  ;;  %v534_v30 = vadd.f32 %v533_v63, %v532_v44 }
  0x34   : > { %978 = vlog2.f32 %v487_v27  ;;  %v659_v36 = vadd.f32 %v658_v32, %v649_v28  ;;  %v973_v38 = vpop.eup %972  ;;  %v615_v39 = vrot.slane %v971_v29, 4  ;;  %v653_v40 = vadd.f32 %v652_v31, %v648_v17 }
  0x35   : > { %v500_v33 = vadd.f32 %v499_v25, %v498_v22  ;;  %980 = vlog2.f32 %v493_v24  ;;  %v670_v61 = vsel %vm456_vm1, %v651_v53, 0.0  ;;  %v975_v41 = vpop.eup %974  ;;  %v540_v42 = vadd.f32 %v539_v8, %v1143_v45 }
  0x36   : > { %982 = vpow2.f32 %v613_v16  ;;  %v547_v43 = vadd.f32 %v546_v26, %v545_v60  ;;  %v621_v46 = vrot.slane %v973_v38, 4  ;;  %v660_v47 = vrot.slane %v659_v36, 2 }
  0x37   : > { %984 = vlog2.f32 %v500_v33  ;;  %v932_v37 = vsel %vm432_vm6, 1.0, %v1018_v2  ;;  %v616_v44 = vadd.f32 %v971_v29, %v615_v39  ;;  %v627_v50 = vrot.slane %v975_v41, 4 }
  0x38   : > { %v1167_v51 = vadd.f32 %v664_v34, %v650_v23  ;;  %v698_v55 = vadd.f32 %v932_v37, %v695_v49  ;;  %v622_v56 = vadd.f32 %v973_v38, %v621_v46  ;;  %v671_v45 = vrot.slane %v670_v61, 4 }
  0x39   : > { %v977_v48 = vpop.eup %976  ;;  %v617_v59 = vrot.slane %v616_v44, 2  ;;  %v628_v60 = vadd.f32 %v975_v41, %v627_v50  ;;  %v654_v62 = vrot.slane %v653_v40, 2  ;;  %v661_v10 = vadd.f32 %v660_v47, %v659_v36 }
  0x3a   : > { %v979_v52 = vpop.eup %978  ;;  %v502_v54 = vmul.f32 0.6931472, %v977_v48  ;;  %699 = vst.msk [vmem:[#allocation4] sm:$0xf] %vm1069_vm0, %v698_v55  ;;  %v623_v2 = vrot.slane %v622_v56, 2  ;;  %v672_v16 = vadd.f32 %v671_v45, %v670_v61  ;;  %v666_v34 = vrot.slane %v1167_v51, 2 }
  0x3b   : > { %v981_v57 = vpop.eup %980  ;;  %v504_v58 = vmul.f32 0.6931472, %v979_v52  ;;  %v618_v19 = vadd.f32 %v617_v59, %v616_v44  ;;  %v629_v13 = vrot.slane %v628_v60, 2  ;;  %v655_v24 = vadd.f32 %v654_v62, %v653_v40 }
  0x3c   : > { %v983_v63 = vpop.eup %982  ;;  %v506_v8 = vmul.f32 0.6931472, %v981_v57  ;;  %v548_v9 = vsub.f32 %v502_v54, %v528_v35  ;;  %v624_v20 = vadd.f32 %v623_v2, %v622_v56  ;;  %v662_v31 = vrot.slane %v661_v10, 1  ;;  %v433_v35 = vld [vmem:[#allocation2] sm:$0xf] }
  0x3d   : > { %v985_v0 = vpop.eup %984  ;;  %v549_v11 = vsub.f32 %v504_v58, %v534_v30  ;;  %v633_v14 = vsel %vm456_vm1, %v983_v63, 0.0  ;;  %v619_v15 = vrot.slane %v618_v19, 1  ;;  %v630_v7 = vadd.f32 %v629_v13, %v628_v60 }
  0x3e   : > { %v508_v3 = vmul.f32 0.6931472, %v985_v0  ;;  %v550_v4 = vsub.f32 %v506_v8, %v540_v42  ;;  %v634_v5 = vrot.slane %v633_v14, 4  ;;  %v625_v21 = vrot.slane %v624_v20, 1 }
  0x3f   : > { %v556_v12 = vrot.slane %v549_v11, 7  ;;  %v620_v28 = vadd.f32 %v619_v15, %v618_v19  ;;  %v631_v23 = vrot.slane %v630_v7, 1  ;;  %v673_v29 = vrot.slane %v672_v16, 2 }
  0x40   : > { %v551_v17 = vsub.f32 %v508_v3, %v547_v43  ;;  %v557_v18 = vrot.slane %v550_v4, 6  ;;  %v635_v22 = vadd.f32 %v634_v5, %v633_v14  ;;  %v626_v26 = vadd.f32 %v625_v21, %v624_v20 }
  0x41   : > { %v560_v27 = vsel %vm559_vm7, %v548_v9, %v556_v12  ;;  %v745_v32 = vld [vmem:[#allocation4] sm:$0xf]  ;;  %v632_v33 = vadd.f32 %v631_v23, %v630_v7  ;;  %986 = vlog2.f32 %v620_v28  ;;  %v667_v50 = vadd.f32 %v666_v34, %v1167_v51 }
  0x42   : > { %v558_v25 = vrot.slane %v551_v17, 5  ;;  %v636_v53 = vrot.slane %v635_v22, 2  ;;  %v747_v36 = vperm.slane %v745_v32, 0  ;;  %v748_v38 = vperm.slane %v745_v32, 1 }
  0x43   : > { %v749_v39 = vperm.slane %v745_v32, 2  ;;  %v750_v41 = vperm.slane %v745_v32, 3  ;;  %988 = vlog2.f32 %v626_v26  ;;  %v674_v52 = vadd.f32 %v673_v29, %v672_v16 }
  0x44   : > { %v562_v30 = vsel %vm561_vm8, %v557_v18, %v558_v25  ;;  %v637_v40 = vadd.f32 %v636_v53, %v635_v22  ;;  %v755_v43 = vsel %vm559_vm7, %v747_v36, 0.0  ;;  %v756_v46 = vsel %vm559_vm7, %v748_v38, 0.0  ;;  %v573_v53 = vld [vmem:[#allocation3] sm:$0xf] }
  0x45   : > { %v564_v61 = vsel %vm563_vm9, %v560_v27, %v562_v30  ;;  %v758_v47 = vsel %vm559_vm7, %v749_v39, 0.0  ;;  %v757_v49 = vadd.f32 %v756_v46, %v755_v43  ;;  %v760_v44 = vsel %vm718_vm10, %v750_v41, 0.0 }
  0x46   : > { %v566_v42 = vsel %vm432_vm6, %v564_v61, 0.0  ;;  %v638_v37 = vrot.slane %v637_v40, 1  ;;  %990 = vlog2.f32 %v632_v33  ;;  %v656_v45 = vrot.slane %v655_v24, 1 }
  0x47   : > { %v567_v48 = vadd.f32 %v566_v42, %v433_v35  ;;  %v987_v54 = vpop.eup %986  ;;  %v759_v55 = vadd.f32 %v758_v47, %v757_v49  ;;  %v663_v57 = vadd.f32 %v662_v31, %v661_v10  ;;  %v668_v58 = vrot.slane %v667_v50, 1 }
  0x48   : > { %v639_v56 = vadd.f32 %v638_v37, %v637_v40  ;;  %v675_v63 = vrot.slane %v674_v52, 1  ;;  %v641_v9 = vmul.f32 0.6931472, %v987_v54  ;;  %v657_v2 = vadd.f32 %v656_v45, %v655_v24 }
  0x49   : > { %572 = vst.msk [vmem:[#allocation2] sm:$0xf] %vm1069_vm0, %v567_v48  ;;  %v989_v59 = vpop.eup %988  ;;  %v761_v60 = vadd.f32 %v760_v44, %v759_v55  ;;  %v669_v51 = vadd.f32 %v668_v58, %v667_v50 }
  0x4a   : > { %992 = vlog2.f32 %v639_v56  ;;  %v643_v62 = vmul.f32 0.6931472, %v989_v59  ;;  %v676_v13 = vadd.f32 %v675_v63, %v674_v52  ;;  %v677_v12 = vsub.f32 %v641_v9, %v657_v2 }
  0x4b   : > { %762 = vadd.xlane.f32.xlu1 %v761_v60 }
  0x4c   : > { %v991_v8 = vpop.eup %990  ;;  %v678_v0 = vsub.f32 %v643_v62, %v663_v57 }
  0x4d   : > { %v645_v11 = vmul.f32 0.6931472, %v991_v8 }
  0x4e   : > { %v685_v7 = vrot.slane %v678_v0, 7 }
  0x4f   : > { %v679_v15 = vsub.f32 %v645_v11, %v669_v51 }
  0x50   : > { %v703_v19 = vld [vmem:[#allocation2] sm:$0xf]  ;;  %v993_v14 = vpop.eup %992  ;;  %v688_v25 = vsel %vm559_vm7, %v677_v12, %v685_v7 }
  0x51   : > { %v705_v3 = vperm.slane %v703_v19, 0  ;;  %v706_v4 = vperm.slane %v703_v19, 1  ;;  %v707_v20 = vperm.slane %v703_v19, 2  ;;  %v708_v10 = vperm.slane %v703_v19, 3 }
  0x52   : > { %v647_v5 = vmul.f32 0.6931472, %v993_v14  ;;  %v686_v27 = vrot.slane %v679_v15, 6 }
  0x53   : > { %v713_v16 = vsel %vm559_vm7, %v705_v3, 0.0  ;;  %v714_v17 = vsel %vm559_vm7, %v706_v4, 0.0  ;;  %v716_v18 = vsel %vm559_vm7, %v707_v20, 0.0  ;;  %v719_v28 = vsel %vm718_vm10, %v708_v10, 0.0 }
  0x54   : > { %v715_v21 = vadd.f32 %v714_v17, %v713_v16  ;;  %v680_v22 = vsub.f32 %v647_v5, %v676_v13 }
  0x56   : > { %v717_v23 = vadd.f32 %v716_v18, %v715_v21  ;;  %v687_v24 = vrot.slane %v680_v22, 5 }
  0x58   : > { %v720_v26 = vadd.f32 %v719_v28, %v717_v23  ;;  %v689_v31 = vsel %vm561_vm8, %v686_v27, %v687_v24 }
  0x59   : > { %v690_v32 = vsel %vm563_vm9, %v688_v25, %v689_v31 }
  0x5a   : > { %721 = vadd.xlane.f32.xlu0 %v720_v26  ;;  %v692_v33 = vsel %vm432_vm6, %v690_v32, 0.0 }
  0x5b   : > { %v693_v34 = vadd.f32 %v692_v33, %v573_v53 }
  0x5d   : > { %694 = vst.msk [vmem:[#allocation3] sm:$0xf] %vm1069_vm0, %v693_v34 }
  0x64   : > { %v725_v29 = vld [vmem:[#allocation3] sm:$0xf] }
  0x65   : > { %v727_v35 = vperm.slane %v725_v29, 0  ;;  %v728_v30 = vperm.slane %v725_v29, 1  ;;  %v729_v36 = vperm.slane %v725_v29, 2  ;;  %v730_v38 = vperm.slane %v725_v29, 3 }
  0x67   : > { %v735_v39 = vsel %vm559_vm7, %v727_v35, 0.0  ;;  %v736_v61 = vsel %vm559_vm7, %v728_v30, 0.0  ;;  %v738_v41 = vsel %vm559_vm7, %v729_v36, 0.0  ;;  %v740_v40 = vsel %vm718_vm10, %v730_v38, 0.0 }
  0x68   : > { %v737_v6 = vadd.f32 %v736_v61, %v735_v39 }
  0x6a   : > { %v739_v42 = vadd.f32 %v738_v41, %v737_v6 }
  0x6c   : > { %v741_v43 = vadd.f32 %v740_v40, %v739_v42 }
  0x6e   : > { %742 = vadd.xlane.f32.xlu0 %v741_v43 }
  0xbe   : > { %v763_v1 = vpop.xlane.xlu1 %762 }
  0xbf   : > { %764 = vst.msk [vmem:[%s418_s10] sm:$0x1] %vm723_vm11, %v763_v1 }
  0xcd   : > { %v722_v46 = vpop.xlane.xlu0 %721 }
  0xce   : > { %724 = vst.msk [vmem:[%s408_s13] sm:$0x1] %vm723_vm11, %v722_v46 }
  0xe1   : > { %v743_v47 = vpop.xlane.xlu0 %742 }
  0xe2   : > { %744 = vst.msk [vmem:[%s413_s16] sm:$0x1] %vm723_vm11, %v743_v47 }
  0xe3 PF: > { %s16_s20 = sadd.s32 1, %s1016_s20   ;;  %s1237_s18 = smov %s1012_s19 }
  0xe4   : > { %p13_p5 = scmp.ge.s32.totalorder %s16_s20, 4   ;;  %s1238_s19 = smov %s1240_s21 }
  0xe6   :  { %15 = sbr.rel (!%p13_p5) target bundleno = 2 (0x2), region = 100 }

</bundles_post_ra>
